<compile_context>
chip_gen: v5e
topology: v5e:2x2
jax: 0.10.0
libtpu: 0.0.40
codegen_flags: <defaults>
</compile_context>

<pallas_src>
import numpy as np
import jax
import jax.numpy as jnp
from jax.experimental import pallas as pl
from jax.experimental.pallas import tpu as pltpu

_EPS = 1e-5  # matches `eps = 1e-05` in the PyTorch forward
_LANES = 128
_MAX_BLOCK_ROWS = 1024  # 1024*128*4B = 512 KiB per operand block


def _sga_train_kernel(inv_t_ref, x_ref, noise_ref, o_ref):
    """Training-mode forward: fused SGA soft quantization (elementwise)."""
    x = x_ref[...]
    inv_t = inv_t_ref[0]  # 1/T, precomputed on host (hoisted out of the body)

    x_floor = jnp.floor(x)
    x_ceil = jnp.ceil(x)

    # Clamped distances to the two integer boundaries.
    xi1 = jnp.clip(x - x_floor, -1.0 + _EPS, 1.0 - _EPS)
    xi2 = jnp.clip(x_ceil - x, -1.0 + _EPS, 1.0 - _EPS)

    # atanh1 - atanh2, folded into a single log.
    d = 0.5 * jnp.log(((1.0 + xi1) * (1.0 - xi2)) / ((1.0 - xi1) * (1.0 + xi2)))

    # RelaxedOneHotCategorical(T, softmax([-atanh1/T, -atanh2/T])).rsample(),
    # reduced to a single sigmoid:
    #   r_ceil = sigmoid(((atanh1 - atanh2)/T + (g2 - g1)) / T),  g2-g1 ~ Logistic.
    z = (d * inv_t + noise_ref[...]) * inv_t
    r_ceil = 1.0 / (1.0 + jnp.exp(-z))

    # x_tilde = floor * (1 - r_ceil) + ceil * r_ceil
    o_ref[...] = x_floor + (x_ceil - x_floor) * r_ceil
    # TODO(synk): the torch.no_grad() wandb.log of |x_soft - round(x)|.mean() is a
    # host-side logging side effect with no Pallas equivalent; omitted.


def _round_kernel(x_ref, o_ref):
    """Eval-mode forward: torch.round (round-half-to-even, same as jnp.round)."""
    o_ref[...] = jnp.round(x_ref[...])


def _annealed_temperature(it, r, ub, lb=1e-8, t0=0):
    """scheme == 'exp0', backend == np (matches the module's training path)."""
    tau = ub * np.exp(-r * (it - t0))
    return float(np.minimum(np.maximum(tau, lb), ub))


def _round_up(a, m):
    return ((a + m - 1) // m) * m


def quantizator_sga(x, it=None, mode=None, total_it=None, key=None, seed=0):
    """Forward pass of Quantizator_SGA (gap/c hyperparams are unused in forward)."""
    orig_shape = x.shape
    orig_dtype = x.dtype
    n = int(np.prod(orig_shape))

    # Lane-dense 2-D slab, padded so every block is full (no whole-array fallback,
    # no partial tiles — robust for any input size, on any TPU generation).
    rows = -(-n // _LANES)
    block_rows = min(_MAX_BLOCK_ROWS, _round_up(rows, 8))
    padded_rows = _round_up(rows, block_rows)
    n_padded = padded_rows * _LANES

    xf = x.reshape(-1).astype(jnp.float32)
    if n_padded != n:
        xf = jnp.pad(xf, (0, n_padded - n))
    x2 = xf.reshape(padded_rows, _LANES)
    grid = (padded_rows // block_rows,)

    if mode == "training":
        assert it is not None
        t0 = int(total_it * 0.35)
        T = _annealed_temperature(it, r=0.001, ub=0.5, t0=t0)
        inv_t = jnp.array([1.0 / T], dtype=jnp.float32)

        if key is None:
            key = jax.random.PRNGKey(seed)
        # L = g2 - g1 (difference of two independent Gumbel(0,1)) ~ Logistic(0,1).
        noise = jax.random.logistic(key, (padded_rows, _LANES), dtype=jnp.float32)

        out = pl.pallas_call(
            _sga_train_kernel,
            out_shape=jax.ShapeDtypeStruct((padded_rows, _LANES), jnp.float32),
            grid_spec=pltpu.PrefetchScalarGridSpec(
                num_scalar_prefetch=1,
                grid=grid,
                in_specs=[
                    pl.BlockSpec((block_rows, _LANES), lambda i, inv_t: (i, 0)),
                    pl.BlockSpec((block_rows, _LANES), lambda i, inv_t: (i, 0)),
                ],
                out_specs=pl.BlockSpec((block_rows, _LANES),
                                       lambda i, inv_t: (i, 0)),
            ),
            compiler_params=pltpu.CompilerParams(
                dimension_semantics=("parallel",)),
            cost_estimate=pl.CostEstimate(
                flops=int(20 * n_padded),
                transcendentals=int(2 * n_padded),
                bytes_accessed=int(12 * n_padded)),
        )(inv_t, x2, noise)
    else:
        out = pl.pallas_call(
            _round_kernel,
            out_shape=jax.ShapeDtypeStruct((padded_rows, _LANES), jnp.float32),
            grid=grid,
            in_specs=[pl.BlockSpec((block_rows, _LANES), lambda i: (i, 0))],
            out_specs=pl.BlockSpec((block_rows, _LANES), lambda i: (i, 0)),
            compiler_params=pltpu.CompilerParams(
                dimension_semantics=("parallel",)),
            cost_estimate=pl.CostEstimate(
                flops=int(n_padded),
                transcendentals=0,
                bytes_accessed=int(8 * n_padded)),
        )(x2)

    return out.reshape(-1)[:n].reshape(orig_shape).astype(orig_dtype)


if __name__ == "__main__":
    key = jax.random.PRNGKey(0)
    kx, knoise = jax.random.split(key)
    # NCHW-style input, as the PyTorch module would typically receive.
    x = jax.random.normal(kx, (2, 4, 16, 16), dtype=jnp.float32) * 3.0

    # training mode (SGA soft quantization with Gumbel/Logistic relaxation)
    y_train = quantizator_sga(x, it=120, mode="training", total_it=1000, key=knoise)
    # eval mode (hard rounding)
    y_eval = quantizator_sga(x, mode=None)
    jax.block_until_ready((y_train, y_eval))

    # sanity checks: soft output lies in [floor(x), ceil(x)]; eval == round(x)
    xf, xc = jnp.floor(x), jnp.ceil(x)
    assert bool(jnp.all(y_train >= xf - 1e-4) & jnp.all(y_train <= xc + 1e-4))
    assert bool(jnp.allclose(y_eval, jnp.round(x)))
    print("KERNEL_OK")
</pallas_src>

<mosaic_0001>
module attributes {stable_mosaic.version = 11 : i64} {
  func.func @_sga_train_kernel(%arg0: i32, %arg1: memref<1xf32, #tpu.memory_space<smem>>, %arg2: memref<16x128xf32, #tpu.memory_space<vmem>>, %arg3: memref<16x128xf32, #tpu.memory_space<vmem>>, %arg4: memref<16x128xf32, #tpu.memory_space<vmem>>) attributes {dimension_semantics = [#tpu.dimension_semantics<parallel>], iteration_bounds = array<i64: 1>, scalar_prefetch = 1 : i64, scratch_operands = 0 : i64, tpu.core_type = #tpu.core_type<tc>, window_params = [{transform_indices = @transform_0, window_bounds = array<i64: 16, 128>}, {transform_indices = @transform_1, window_bounds = array<i64: 16, 128>}, {transform_indices = @transform_2, window_bounds = array<i64: 16, 128>}]} {
    %c0 = arith.constant 0 : index
    %c0_0 = arith.constant 0 : index
    %0 = vector.load %arg2[%c0, %c0_0] : memref<16x128xf32, #tpu.memory_space<vmem>>, vector<16x128xf32>
    %c0_1 = arith.constant 0 : index
    %1 = memref.load %arg1[%c0_1] : memref<1xf32, #tpu.memory_space<smem>>
    %2 = math.floor %0 : vector<16x128xf32>
    %3 = math.ceil %0 : vector<16x128xf32>
    %4 = arith.subf %0, %2 : vector<16x128xf32>
    %cst = arith.constant -0.999989986 : f32
    %cst_2 = arith.constant 0.999989986 : f32
    %5 = vector.broadcast %cst : f32 to vector<16x128xf32>
    %6 = arith.maximumf %5, %4 : vector<16x128xf32>
    %7 = vector.broadcast %cst_2 : f32 to vector<16x128xf32>
    %8 = arith.minimumf %7, %6 : vector<16x128xf32>
    %9 = arith.subf %3, %0 : vector<16x128xf32>
    %cst_3 = arith.constant -0.999989986 : f32
    %cst_4 = arith.constant 0.999989986 : f32
    %10 = vector.broadcast %cst_3 : f32 to vector<16x128xf32>
    %11 = arith.maximumf %10, %9 : vector<16x128xf32>
    %12 = vector.broadcast %cst_4 : f32 to vector<16x128xf32>
    %13 = arith.minimumf %12, %11 : vector<16x128xf32>
    %cst_5 = arith.constant 1.000000e+00 : f32
    %14 = vector.broadcast %cst_5 : f32 to vector<16x128xf32>
    %15 = arith.addf %14, %8 : vector<16x128xf32>
    %cst_6 = arith.constant 1.000000e+00 : f32
    %16 = vector.broadcast %cst_6 : f32 to vector<16x128xf32>
    %17 = arith.subf %16, %13 : vector<16x128xf32>
    %18 = arith.mulf %15, %17 : vector<16x128xf32>
    %cst_7 = arith.constant 1.000000e+00 : f32
    %19 = vector.broadcast %cst_7 : f32 to vector<16x128xf32>
    %20 = arith.subf %19, %8 : vector<16x128xf32>
    %cst_8 = arith.constant 1.000000e+00 : f32
    %21 = vector.broadcast %cst_8 : f32 to vector<16x128xf32>
    %22 = arith.addf %21, %13 : vector<16x128xf32>
    %23 = arith.mulf %20, %22 : vector<16x128xf32>
    %24 = arith.divf %18, %23 : vector<16x128xf32>
    %25 = math.log %24 : vector<16x128xf32>
    %cst_9 = arith.constant 5.000000e-01 : f32
    %26 = vector.broadcast %cst_9 : f32 to vector<16x128xf32>
    %27 = arith.mulf %26, %25 : vector<16x128xf32>
    %28 = vector.broadcast %1 : f32 to vector<16x128xf32>
    %29 = arith.mulf %27, %28 : vector<16x128xf32>
    %c0_10 = arith.constant 0 : index
    %c0_11 = arith.constant 0 : index
    %30 = vector.load %arg3[%c0_10, %c0_11] : memref<16x128xf32, #tpu.memory_space<vmem>>, vector<16x128xf32>
    %31 = arith.addf %29, %30 : vector<16x128xf32>
    %32 = vector.broadcast %1 : f32 to vector<16x128xf32>
    %33 = arith.mulf %31, %32 : vector<16x128xf32>
    %cst_12 = arith.constant 0.000000e+00 : f32
    %34 = vector.broadcast %cst_12 : f32 to vector<16x128xf32>
    %35 = arith.subf %34, %33 : vector<16x128xf32>
    %36 = math.exp %35 : vector<16x128xf32>
    %cst_13 = arith.constant 1.000000e+00 : f32
    %37 = vector.broadcast %cst_13 : f32 to vector<16x128xf32>
    %38 = arith.addf %37, %36 : vector<16x128xf32>
    %cst_14 = arith.constant 1.000000e+00 : f32
    %39 = vector.broadcast %cst_14 : f32 to vector<16x128xf32>
    %40 = arith.divf %39, %38 : vector<16x128xf32>
    %41 = arith.subf %3, %2 : vector<16x128xf32>
    %42 = arith.mulf %41, %40 : vector<16x128xf32>
    %43 = arith.addf %2, %42 : vector<16x128xf32>
    %c0_15 = arith.constant 0 : index
    %c0_16 = arith.constant 0 : index
    %44 = vector.load %arg4[%c0_15, %c0_16] : memref<16x128xf32, #tpu.memory_space<vmem>>, vector<16x128xf32>
    tpu.vector_store %arg4[%c0_15, %c0_16], %43 {strides = array<i32>} : memref<16x128xf32, #tpu.memory_space<vmem>>, vector<16x128xf32>,
    return
  }
  func.func @transform_0(%arg0: i32, %arg1: memref<1xf32, #tpu.memory_space<smem>>) -> (i32, i32) {
    %c0_i32 = arith.constant 0 : i32
    %c0_i32_0 = arith.constant 0 : i32
    return %arg0, %c0_i32 : i32, i32
  }
  func.func @transform_1(%arg0: i32, %arg1: memref<1xf32, #tpu.memory_space<smem>>) -> (i32, i32) {
    %c0_i32 = arith.constant 0 : i32
    %c0_i32_0 = arith.constant 0 : i32
    return %arg0, %c0_i32 : i32, i32
  }
  func.func @transform_2(%arg0: i32, %arg1: memref<1xf32, #tpu.memory_space<smem>>) -> (i32, i32) {
    %c0_i32 = arith.constant 0 : i32
    %c0_i32_0 = arith.constant 0 : i32
    return %arg0, %c0_i32 : i32, i32
  }
}

</mosaic_0001>

<bundles_post_ra>
// kernel: tpu_custom_call.1
= control target key start
LH: loop header
LB: loop body
LE: loop exit
PB: predicated region body
PF: predicated region fallthrough
CT: control target
= control target key end

     0   :  { %9 = vsyncpa [#allocation5], 0  ;;  %s367_s0 = inlined_call_operand.<no memory space> [shape: f32[1], index: 0, kind: input, shape index: {}]   ;;  %s368_s1 = inlined_call_operand.hbm [shape: f32[16,128], index: 1, kind: input, shape index: {}]   ;;  %s369_s2 = inlined_call_operand.hbm [shape: f32[16,128], index: 2, kind: input, shape index: {}]   ;;  %s370_s3 = inlined_call_operand.hbm [shape: f32[16,128], index: 3, kind: output, shape index: {}]  }
   0x1   :  { %10 = vsyncpa [#allocation8], 0 }
   0x2   :  { %11 = vsyncpa [#allocation6], 0  ;;  %s16_s14 = sshll.u32 %s368_s1, 4  ;;  %s291_s15 = smov [#allocation4]   ;;  %s17_s14 = int_to_ptr.hbm [resolvable:$true] %s16_s14 }
   0x3   :  { %s18_s16 = sshll.u32 %s291_s15, 4  ;;  %s29_s19 = sshll.u32 %s369_s2, 4  ;;  %s19_s16 = int_to_ptr.vmem [resolvable:$true] %s18_s16  ;;  %s30_s19 = int_to_ptr.hbm [resolvable:$true] %s29_s19 }
   0x4   :  { %s292_s20 = smov 128   ;;  %s293_s21 = smov 8  }
   0x5   :  { %24 = dma.hbm_to_vmem [thread:$0]  %s17_s14, 256, %s19_s16, [#allocation5], %s292_s20, %s292_s20, %s293_s21  }
   0x6   :  { %s294_s22 = smov [#allocation7]  }
   0x7   :  { %s31_s23 = sshll.u32 %s294_s22, 4  ;;  %s32_s23 = int_to_ptr.vmem [resolvable:$true] %s31_s23 }
   0x8   :  { %37 = dma.hbm_to_vmem [thread:$0]  %s30_s19, 256, %s32_s23, [#allocation8], %s292_s20, %s292_s20, %s293_s21  }
   0x9   :  { %285 = dma.done.wait [#allocation5], 256  }
   0xa   :  { %286 = vsyncadd [#allocation5], 4294967040 }
   0xb   :  { %287 = dma.done.wait [#allocation8], 256  }
   0xc   :  { %288 = vsyncadd [#allocation8], 4294967040  ;;  %v328_v0 = vld [vmem:[#allocation4] sm:$0xff]  ;;  %v330_v1 = vld [vmem:[#allocation4 + $0x8] sm:$0xff]  ;;  %v113_v50 = vstv %s367_s0  ;;  %s295_s0 = smov [#allocation9]   ;;  %s174_s27 = sshll.u32 %s370_s3, 4  ;;  %s175_s27 = int_to_ptr.hbm [resolvable:$true] %s174_s27 }
   0xd   :  { %v333_v2 = vfloor.f32 %v328_v0  ;;  %v51_v3 = vceil.f32 %v328_v0  ;;  %v337_v4 = vfloor.f32 %v330_v1  ;;  %v52_v5 = vceil.f32 %v330_v1  ;;  %v116_v53 = vld [vmem:[#allocation7] sm:$0xff]  ;;  %v117_v58 = vld [vmem:[#allocation7 + $0x8] sm:$0xff]  ;;  %s172_s24 = sshll.u32 %s295_s0, 4  ;;  %s173_s24 = int_to_ptr.vmem [resolvable:$true] %s172_s24 }
   0xf   :  { %v53_v6 = vsub.f32 %v328_v0, %v333_v2  ;;  %v59_v7 = vsub.f32 %v51_v3, %v328_v0  ;;  %v54_v8 = vsub.f32 %v330_v1, %v337_v4  ;;  %v60_v9 = vsub.f32 %v52_v5, %v330_v1 }
  0x11   :  { %v188_v10 = vclamps-f32 %v53_v6, 0.99999  ;;  %v190_v11 = vclamps-f32 %v59_v7, 0.99999  ;;  %v189_v12 = vclamps-f32 %v54_v8, 0.99999 }
  0x12   :  { %v191_v13 = vclamps-f32 %v60_v9, 0.99999 }
  0x13   :  { %v71_v14 = vsub.f32 1.0, %v188_v10  ;;  %v73_v15 = vadd.f32 1.0, %v190_v11  ;;  %v72_v16 = vsub.f32 1.0, %v189_v12  ;;  %v65_v23 = vadd.f32 1.0, %v188_v10 }
  0x14   :  { %v74_v18 = vadd.f32 1.0, %v191_v13  ;;  %v67_v24 = vsub.f32 1.0, %v190_v11  ;;  %v66_v28 = vadd.f32 1.0, %v189_v12  ;;  %v68_v32 = vsub.f32 1.0, %v191_v13 }
  0x15   :  { %v75_v17 = vmul.f32 %v73_v15, %v71_v14 }
  0x16   :  { %v76_v19 = vmul.f32 %v74_v18, %v72_v16  ;;  %v69_v36 = vmul.f32 %v67_v24, %v65_v23  ;;  %v70_v42 = vmul.f32 %v68_v32, %v66_v28  ;;  %v161_v32 = vsub.f32 %v52_v5, %v337_v4 }
  0x17   :  { %197 = vrcp.f32 %v75_v17  ;;  %v88_v22 = vand.u32 2147483648, %v75_v17  ;;  %vm82_vm0 = vweird.f32 %v75_v17  ;;  %v86_v27 = vand.u32 2147483647, %v75_v17 }
  0x18   :  { %199 = vrcp.f32 %v76_v19  ;;  %v103_v33 = vand.u32 2147483648, %v76_v19  ;;  %vm97_vm3 = vweird.f32 %v76_v19  ;;  %v101_v35 = vand.u32 2147483647, %v76_v19 }
  0x19   :  { %v89_v31 = vor.u32 1.1754944e-38, %v88_v22  ;;  %vm87_vm5 = vcmp.eq.f32.partialorder %v86_v27, 8.507059e+37 }
  0x1a   :  { %v104_v40 = vor.u32 1.1754944e-38, %v103_v33  ;;  %vm102_vm7 = vcmp.eq.f32.partialorder %v101_v35, 8.507059e+37 }
  0x1d   :  { %v198_v20 = vpop.eup %197 }
  0x1e   :  { %v78_v21 = vmul.f32 %v198_v20, %v75_v17  ;;  %v200_v25 = vpop.eup %199  ;;  %vm83_vm1 = vweird.f32 %v198_v20 }
  0x1f   :  { %v93_v29 = vmul.f32 %v200_v25, %v76_v19  ;;  %vm84_vm2 = vmor %vm82_vm0, %vm83_vm1  ;;  %vm98_vm4 = vweird.f32 %v200_v25 }
  0x20   :  { %v79_v26 = vsub.f32 1.0, %v78_v21  ;;  %vm99_vm6 = vmor %vm97_vm3, %vm98_vm4 }
  0x21   :  { %v94_v34 = vsub.f32 1.0, %v93_v29 }
  0x22   :  { %v80_v30 = vmul.f32 %v198_v20, %v79_v26  ;;  %v160_v26 = vsub.f32 %v51_v3, %v333_v2 }
  0x23   :  { %v95_v38 = vmul.f32 %v200_v25, %v94_v34 }
  0x24   :  { %v81_v37 = vadd.f32 %v198_v20, %v80_v30 }
  0x25   :  { %v96_v43 = vadd.f32 %v200_v25, %v95_v38 }
  0x26   :  { %v85_v39 = vsel %vm84_vm2, %v198_v20, %v81_v37 }
  0x27   :  { %v90_v41 = vsel %vm87_vm5, %v89_v31, %v85_v39  ;;  %v100_v45 = vsel %vm99_vm6, %v200_v25, %v96_v43 }
  0x28   :  { %v91_v44 = vmul.f32 %v90_v41, %v69_v36  ;;  %v105_v46 = vsel %vm102_vm7, %v104_v40, %v100_v45 }
  0x29   :  { %v106_v47 = vmul.f32 %v105_v46, %v70_v42 }
  0x2a   :  { %201 = vlog2.f32 %v91_v44 }
  0x2b   :  { %203 = vlog2.f32 %v106_v47 }
  0x30   :  { %v202_v48 = vpop.eup %201 }
  0x31   :  { %v108_v49 = vmul.f32 0.6931472, %v202_v48  ;;  %v204_v51 = vpop.eup %203 }
  0x32   :  { %v110_v54 = vmul.f32 0.6931472, %v204_v51 }
  0x33   :  { %v111_v52 = vmul.f32 0.5, %v108_v49 }
  0x34   :  { %v112_v56 = vmul.f32 0.5, %v110_v54 }
  0x35   :  { %v114_v55 = vmul.f32 %v113_v50, %v111_v52 }
  0x36   :  { %v115_v59 = vmul.f32 %v113_v50, %v112_v56 }
  0x37   :  { %v118_v57 = vadd.f32 %v116_v53, %v114_v55 }
  0x38   :  { %v119_v61 = vadd.f32 %v117_v58, %v115_v59 }
  0x39   :  { %v120_v60 = vmul.f32 %v118_v57, %v113_v50 }
  0x3a   :  { %v121_v63 = vmul.f32 %v119_v61, %v113_v50 }
  0x3b   :  { %v122_v62 = vsub.f32 0.0, %v120_v60 }
  0x3c   :  { %v123_v7 = vsub.f32 0.0, %v121_v63 }
  0x3d   :  { %v124_v6 = vmul.f32 1.442695, %v122_v62 }
  0x3e   :  { %v126_v8 = vmul.f32 1.442695, %v123_v7 }
  0x3f   :  { %205 = vpow2.f32 %v124_v6 }
  0x40   :  { %207 = vpow2.f32 %v126_v8 }
  0x45   :  { %v206_v9 = vpop.eup %205 }
  0x46   :  { %v128_v10 = vadd.f32 1.0, %v206_v9  ;;  %v208_v11 = vpop.eup %207 }
  0x47   :  { %v129_v12 = vadd.f32 1.0, %v208_v11 }
  0x48   :  { %209 = vrcp.f32 %v128_v10  ;;  %v141_v15 = vand.u32 2147483648, %v128_v10  ;;  %vm135_vm8 = vweird.f32 %v128_v10  ;;  %v139_v18 = vand.u32 2147483647, %v128_v10 }
  0x49   :  { %211 = vrcp.f32 %v129_v12  ;;  %v156_v22 = vand.u32 2147483648, %v129_v12  ;;  %vm150_vm11 = vweird.f32 %v129_v12  ;;  %v154_v24 = vand.u32 2147483647, %v129_v12 }
  0x4a   :  { %v142_v21 = vor.u32 1.1754944e-38, %v141_v15  ;;  %vm140_vm13 = vcmp.eq.f32.partialorder %v139_v18, 8.507059e+37 }
  0x4b   :  { %v157_v29 = vor.u32 1.1754944e-38, %v156_v22  ;;  %vm155_vm15 = vcmp.eq.f32.partialorder %v154_v24, 8.507059e+37 }
  0x4e   :  { %v210_v13 = vpop.eup %209 }
  0x4f   :  { %v131_v14 = vmul.f32 %v210_v13, %v128_v10  ;;  %v212_v16 = vpop.eup %211  ;;  %vm136_vm9 = vweird.f32 %v210_v13 }
  0x50   :  { %v146_v19 = vmul.f32 %v212_v16, %v129_v12  ;;  %vm137_vm10 = vmor %vm135_vm8, %vm136_vm9  ;;  %vm151_vm12 = vweird.f32 %v212_v16 }
  0x51   :  { %v132_v17 = vsub.f32 1.0, %v131_v14  ;;  %vm152_vm14 = vmor %vm150_vm11, %vm151_vm12 }
  0x52   :  { %v147_v23 = vsub.f32 1.0, %v146_v19 }
  0x53   :  { %v133_v20 = vmul.f32 %v210_v13, %v132_v17 }
  0x54   :  { %v148_v27 = vmul.f32 %v212_v16, %v147_v23 }
  0x55   :  { %v134_v25 = vadd.f32 %v210_v13, %v133_v20 }
  0x56   :  { %v149_v31 = vadd.f32 %v212_v16, %v148_v27 }
  0x57   :  { %v138_v28 = vsel %vm137_vm10, %v210_v13, %v134_v25 }
  0x58   :  { %v143_v30 = vsel %vm140_vm13, %v142_v21, %v138_v28  ;;  %v153_v34 = vsel %vm152_vm14, %v212_v16, %v149_v31 }
  0x59   :  { %v162_v33 = vmul.f32 %v160_v26, %v143_v30  ;;  %v158_v36 = vsel %vm155_vm15, %v157_v29, %v153_v34 }
  0x5a   :  { %v163_v0 = vmul.f32 %v161_v32, %v158_v36 }
  0x5b   :  { %v164_v35 = vadd.f32 %v162_v33, %v333_v2 }
  0x5c   :  { %v165_v3 = vadd.f32 %v163_v0, %v337_v4 }
  0x5d   :  { %166 = vst [vmem:[#allocation9] sm:$0xff] %v164_v35 }
  0x5e   :  { %167 = vst [vmem:[#allocation9 + $0x8] sm:$0xff] %v165_v3 }
  0x5f   :  { %180 = dma.vmem_to_hbm [thread:$0]  %s173_s24, 256, %s175_s27, [#allocation6], %s292_s20, %s292_s20, %s293_s21  }
  0x60   :  { %289 = dma.done.wait [#allocation6], 256  }
  0x61   :  { %290 = vsyncadd [#allocation6], 4294967040 }
  0x62   :  { %185 = vsyncpa [#allocation5], 1 }
  0x63   :  { %186 = vsyncpa [#allocation8], 1 }
  0x64   :  { %187 = vsyncpa [#allocation6], 1 }

</bundles_post_ra>
